<compile_context>
chip_gen: v7x
topology: tpu7x:2x2x1
jax: 0.10.0
libtpu: 0.0.40
codegen_flags: <defaults>
</compile_context>

<pallas_src>
import functools

import jax
import jax.numpy as jnp
from jax import lax
from jax.experimental import pallas as pl
from jax.experimental.pallas import tpu as pltpu

HIDDEN = 8  # the module hardcodes self.hidden_channels = 8


@functools.lru_cache(maxsize=None)
def _roll_is_jnp_like() -> bool:
    """Pin down pltpu.roll's rotate direction once with a tiny probe kernel,
    so the tap shifts below are correct regardless of rotate convention."""
    def probe(x_ref, o_ref):
        o_ref[...] = pltpu.roll(x_ref[...], shift=1, axis=1)

    x = lax.broadcasted_iota(jnp.float32, (8, 128), 1)
    y = pl.pallas_call(probe,
                       out_shape=jax.ShapeDtypeStruct((8, 128), jnp.float32))(x)
    return bool(y[0, 1] == 0.0)  # jnp.roll(x, 1) moves x[..., 0] to index 1


def _tap_shifts(K, PAD, W, lanes):
    """Lane-rotation amount per conv tap t=dy*K+dx so that (before masking)
    rolled[:, p] == v[:, p + (dy-PAD)*W + (dx-PAD)] over a `lanes`-wide axis."""
    jnp_like = _roll_is_jnp_like()
    shifts = []
    for t in range(K * K):
        s = (t // K - PAD) * W + (t % K - PAD)
        shifts.append(int((-s) % lanes) if jnp_like else int(s % lanes))
    return tuple(shifts)


def _pad_mask(K, PAD, H, W, C, T):
    """(K*K*C, T*H*W) 0/1 mask zeroing taps that land in the conv zero-padding
    ring.  Tiled T times along the lane axis so it also zeroes the lane-roll
    wrap across step boundaries when T steps are flattened onto one lane axis."""
    ys = jnp.arange(H).reshape(H, 1)
    xs = jnp.arange(W).reshape(1, W)
    rows = []
    for t in range(K * K):
        oy, ox = t // K - PAD, t % K - PAD
        valid = (ys + oy >= 0) & (ys + oy < H) & (xs + ox >= 0) & (xs + ox < W)
        rows.append(jnp.tile(valid.reshape(1, H * W), (C, T)))
    return jnp.concatenate(rows, axis=0).astype(jnp.float32)


def _sigmoid(x):
    """Single-EUP sigmoid: sigmoid(x) = 0.5*tanh(x/2) + 0.5 (exact identity)."""
    return 0.5 * jnp.tanh(0.5 * x) + 0.5


def _im2col_bf16(v, shifts, mask_ref, HD, lanes):
    """(C, lanes) f32 -> (K*K*C, lanes) bf16 shifted & zero-padded patch.
    Lane rolls run on the XLU; the per-tap mask row is streamed from VMEM (not
    hoisted) and each masked tap is cast to bf16 immediately (halves live vregs
    and feeds the bf16-native MXU)."""
    taps = []
    for t, r in enumerate(shifts):
        rolled = v if r == 0 else pltpu.roll(v, shift=r, axis=1)
        m = mask_ref[t * HD:(t + 1) * HD, 0:lanes]
        taps.append((rolled * m).astype(jnp.bfloat16))
    return jnp.concatenate(taps, axis=0)


def _fused_lstm_kernel(t_chunk, HD, HW, shifts_x, shifts_h,
                       mask_ref, x_ref, wxT_ref, bx_ref, whT_ref,
                       out_ref, h_ref, c_ref, gx_ref):
    """One grid step = one chunk of t_chunk LSTM steps.

    Prologue (non-recurrent): gx for the whole chunk in ONE wide-N bf16 matmul
    (4*HD, K*K*HD) @ (K*K*HD, t_chunk*HW), bias added, tanh pre-applied to the
    c slot.  Serial loop: per-step 3x3 h-conv as one contraction-72 bf16 matmul
    plus f32 gate math; h/c carried in VMEM scratch across chunks."""
    LX = t_chunk * HW

    @pl.when(pl.program_id(0) == 0)
    def _():
        h_ref[...] = jnp.zeros_like(h_ref)   # old_h = 0
        c_ref[...] = jnp.zeros_like(c_ref)   # old_c = 0

    # ---- chunk prologue: batched x path (no recurrence) ----
    patch_x = _im2col_bf16(x_ref[...], shifts_x, mask_ref, HD, LX)   # (72, LX) bf16
    gx_ref[...] = jnp.dot(wxT_ref[...], patch_x,
                          preferred_element_type=jnp.float32) + bx_ref[...]
    # c-gate pre-activation has no h/c dependence -> hoist tanh off the serial chain
    gx_ref[2 * HD:3 * HD, :] = jnp.tanh(gx_ref[2 * HD:3 * HD, :])

    # ---- serial recurrence ----
    whT = whT_ref[...]          # (3*HD, K*K*HD) bf16, tiny -> hoisted
    h = h_ref[...]              # (HD, HW) f32
    c = c_ref[...]              # (HD, HW) f32
    for tt in range(t_chunk):
        # h-path 3x3 conv: roll-based im2col + ONE contraction-72 bf16 MXU matmul
        patch_h = _im2col_bf16(h, shifts_h, mask_ref, HD, HW)        # (72, HW) bf16
        gh = jnp.dot(whT, patch_h, preferred_element_type=jnp.float32)  # (3*HD, HW)

        gx = gx_ref[:, tt * HW:(tt + 1) * HW]                        # (4*HD, HW) f32

        ci = _sigmoid(gx[0 * HD:1 * HD] + gh[0 * HD:1 * HD])
        cf = _sigmoid(gx[1 * HD:2 * HD] + gh[1 * HD:2 * HD])
        # gx c slot already holds tanh(Wxc(x)+Whc(x)+b); peephole terms dropped
        # because forward() recreates Wci/Wcf/Wco as zeros each call.
        c = cf * c + ci * gx[2 * HD:3 * HD]
        co = _sigmoid(gx[3 * HD:4 * HD] + gh[2 * HD:3 * HD])
        h = co * jnp.tanh(c)
        out_ref[tt] = h.astype(out_ref.dtype)

    h_ref[...] = h
    c_ref[...] = c


def conv_lstm_cell_forward(x, params, kernel_size):
    """x: (steps, C_in, H, W) float32 NCHW (like PyTorch). Returns (steps, 8, H, W)."""
    steps, cin, H, W = x.shape
    K = kernel_size
    PAD = (K - 1) // 2
    HD = HIDDEN
    HW = H * W
    # Whc (a hidden->hidden conv) is applied to the input image in the module,
    # which forces input_channels == hidden_channels == 8.
    assert cin == HD, "CONV_LSTM_CELL requires input_channels == hidden_channels == 8"
    assert HW % 128 == 0, "H*W must be a multiple of 128 for lane-dense tiling"

    # ---- host-side weight packing; all activation reshapes below are free ----
    def to_taps(w):  # torch OIHW (O, I, Kh, Kw) -> (O, Kh*Kw*I): tap-major, channel-minor
        o, i, kh, kw = w.shape
        return jnp.transpose(w, (0, 2, 3, 1)).reshape(o, kh * kw * i)

    # x-path weights for gates (i, f, c, o); Whc folds exactly into the c gate
    # (conv is linear).  MXU operands in bf16; accumulation stays f32.
    wxT = jnp.concatenate([
        to_taps(params["Wxi_w"]),
        to_taps(params["Wxf_w"]),
        to_taps(params["Wxc_w"] + params["Whc_w"]),
        to_taps(params["Wxo_w"]),
    ], axis=0).astype(jnp.bfloat16)                                   # (4*HD, K*K*CIN)
    bx = jnp.concatenate([params["Wxi_b"], params["Wxf_b"],
                          params["Wxc_b"], params["Wxo_b"]]
                         ).reshape(4 * HD, 1).astype(jnp.float32)
    whT = jnp.concatenate([to_taps(params["Whi_w"]),
                           to_taps(params["Whf_w"]),
                           to_taps(params["Who_w"])], axis=0
                          ).astype(jnp.bfloat16)                      # (3*HD, K*K*HD)

    # time blocking: up to 8 LSTM steps per grid iteration; pad the tail chunk
    # with zero steps (outputs for padded steps are discarded below).
    t_chunk = min(steps, 8)
    steps_p = ((steps + t_chunk - 1) // t_chunk) * t_chunk
    n_chunks = steps_p // t_chunk
    LX = t_chunk * HW

    # x -> channel-major over the chunk: (cin, steps_p*HW); lane-dense, one host transpose
    x_cm = jnp.transpose(x.reshape(steps, cin, HW).astype(jnp.float32), (1, 0, 2))
    if steps_p != steps:
        x_cm = jnp.pad(x_cm, ((0, 0), (0, steps_p - steps), (0, 0)))
    x_cm = x_cm.reshape(cin, steps_p * HW)

    mask = _pad_mask(K, PAD, H, W, HD, t_chunk)    # (K*K*HD, LX); CIN == HD so shared
    shifts_x = _tap_shifts(K, PAD, W, LX)          # rolls over the flattened T*HW axis
    shifts_h = _tap_shifts(K, PAD, W, HW)          # rolls over one image's HW axis

    # NOTE: a two-call split (parallel x-path + serial recurrence) only pays off
    # for v7x megacore sharding at much larger H*W*steps; at these sizes the
    # fused single launch (no gx HBM round trip) wins on all generations.
    out_p = pl.pallas_call(
        functools.partial(_fused_lstm_kernel, t_chunk, HD, HW, shifts_x, shifts_h),
        out_shape=jax.ShapeDtypeStruct((steps_p, HD, HW), jnp.float32),
        grid_spec=pltpu.PrefetchScalarGridSpec(
            num_scalar_prefetch=0,
            grid=(n_chunks,),
            in_specs=[
                pl.BlockSpec((K * K * HD, LX), lambda s: (0, 0)),      # pad mask
                pl.BlockSpec((cin, LX), lambda s: (0, s)),             # x chunk
                pl.BlockSpec((4 * HD, K * K * cin), lambda s: (0, 0)),  # wxT (bf16)
                pl.BlockSpec((4 * HD, 1), lambda s: (0, 0)),            # bias
                pl.BlockSpec((3 * HD, K * K * HD), lambda s: (0, 0)),   # whT (bf16)
            ],
            out_specs=pl.BlockSpec((t_chunk, HD, HW), lambda s: (s, 0, 0)),
            scratch_shapes=[
                pltpu.VMEM((HD, HW), jnp.float32),       # hidden-state carry
                pltpu.VMEM((HD, HW), jnp.float32),       # cell-state carry
                pltpu.VMEM((4 * HD, LX), jnp.float32),   # chunk gate pre-activations
            ],
        ),
        compiler_params=pltpu.CompilerParams(
            dimension_semantics=("arbitrary",)),   # state carried across chunks
    )(mask, x_cm, wxT, bx, whT)

    # (steps, HD, H*W) -> NCHW (steps, HD, H, W): free reshape, drop padded steps
    return out_p[:steps].reshape(steps, HD, H, W)


def init_params(key, cin, K, HD):
    keys = jax.random.split(key, 12)

    def w(k, o, i):
        return jax.random.normal(k, (o, i, K, K), jnp.float32) * 0.1

    def b(k, o):
        return jax.random.normal(k, (o,), jnp.float32) * 0.1

    return {
        "Wxi_w": w(keys[0], HD, cin), "Wxi_b": b(keys[1], HD),
        "Wxf_w": w(keys[2], HD, cin), "Wxf_b": b(keys[3], HD),
        "Wxc_w": w(keys[4], HD, cin), "Wxc_b": b(keys[5], HD),
        "Wxo_w": w(keys[6], HD, cin), "Wxo_b": b(keys[7], HD),
        "Whi_w": w(keys[8], HD, HD),
        "Whf_w": w(keys[9], HD, HD),
        "Whc_w": w(keys[10], HD, HD),
        "Who_w": w(keys[11], HD, HD),
    }


def ref_forward(x, params, K):
    """Pure-JAX f32 reference mirroring the PyTorch forward line-by-line."""
    PAD = (K - 1) // 2
    steps, _, H, W = x.shape
    HD = HIDDEN

    def conv(inp, w, b=None):
        y = lax.conv_general_dilated(inp, w, (1, 1), [(PAD, PAD), (PAD, PAD)],
                                     dimension_numbers=("NCHW", "OIHW", "NCHW"))
        if b is not None:
            y = y + b[None, :, None, None]
        return y

    old_h = jnp.zeros((1, HD, H, W), jnp.float32)
    old_c = jnp.zeros((1, HD, H, W), jnp.float32)
    wci = wcf = wco = jnp.zeros((1, HD, H, W), jnp.float32)
    outs = []
    for s in range(steps):
        xin = x[s:s + 1]
        ci = jax.nn.sigmoid(conv(xin, params["Wxi_w"], params["Wxi_b"]) +
                            conv(old_h, params["Whi_w"]) + old_c * wci)
        cf = jax.nn.sigmoid(conv(xin, params["Wxf_w"], params["Wxf_b"]) +
                            conv(old_h, params["Whf_w"]) + old_c * wcf)
        cc = cf * old_c + ci * jnp.tanh(conv(xin, params["Wxc_w"], params["Wxc_b"]) +
                                        conv(xin, params["Whc_w"]))
        co = jax.nn.sigmoid(conv(xin, params["Wxo_w"], params["Wxo_b"]) +
                            conv(old_h, params["Who_w"]) + cc * wco)
        ch = co * jnp.tanh(cc)
        old_h, old_c = ch, cc
        outs.append(ch)
    return jnp.concatenate(outs, 0)


if __name__ == "__main__":
    key = jax.random.PRNGKey(0)
    kx, kp = jax.random.split(key)

    # input_channels must equal hidden(=8) because the module applies Whc to the input.
    # steps=10 exercises chunking (t_chunk=8), cross-chunk h/c carry and tail padding.
    steps, cin, H, W, K = 10, 8, 16, 16, 3
    x = jax.random.normal(kx, (steps, cin, H, W), jnp.float32)
    params = init_params(kp, cin, K, HIDDEN)

    out = conv_lstm_cell_forward(x, params, K)
    out = jax.block_until_ready(out)
    assert out.shape == (steps, HIDDEN, H, W)

    ref = ref_forward(x, params, K)
    err = float(jnp.max(jnp.abs(out - ref)))
    # bf16 MXU operands with f32 accumulation -> parity tolerance loosened vs f32 reference
    assert err < 5e-2, f"max abs err vs reference: {err}"

    print("KERNEL_OK")
</pallas_src>

<mosaic_0001>
module attributes {stable_mosaic.version = 11 : i64} {
  func.func @probe(%arg0: memref<8x128xf32, #tpu.memory_space<vmem>>, %arg1: memref<8x128xf32, #tpu.memory_space<vmem>>) attributes {dimension_semantics = [], scalar_prefetch = 0 : i64, scratch_operands = 0 : i64, tpu.core_type = #tpu.core_type<tc>} {
    %c0 = arith.constant 0 : index
    %c0_0 = arith.constant 0 : index
    %0 = vector.load %arg0[%c0, %c0_0] : memref<8x128xf32, #tpu.memory_space<vmem>>, vector<8x128xf32>
    %c1_i32 = arith.constant 1 : i32
    %1 = tpu.dynamic_rotate %0 by %c1_i32 dim 1 : vector<8x128xf32>, i32 -> vector<8x128xf32>
    %c0_1 = arith.constant 0 : index
    %c0_2 = arith.constant 0 : index
    %2 = vector.load %arg1[%c0_1, %c0_2] : memref<8x128xf32, #tpu.memory_space<vmem>>, vector<8x128xf32>
    tpu.vector_store %arg1[%c0_1, %c0_2], %1 {strides = array<i32>} : memref<8x128xf32, #tpu.memory_space<vmem>>, vector<8x128xf32>,
    return
  }
}

</mosaic_0001>

<bundles_post_ra>
// kernel: tpu_custom_call.1
= control target key start
LH: loop header
LB: loop body
LE: loop exit
PB: predicated region body
PF: predicated region fallthrough
CT: control target
= control target key end

     0   :  { %6 = vsyncpa [#allocation3], 0  ;;  %s128_s0 = inlined_call_operand.hbm [shape: f32[8,128], index: 0, kind: input, shape index: {}]   ;;  %s129_s1 = inlined_call_operand.hbm [shape: f32[8,128], index: 1, kind: output, shape index: {}]  }
   0x1   :  { %7 = vsyncpa [#allocation4], 0  ;;  %s91_s6 = smov [#allocation2]   ;;  %s43_s10 = scalar_lea.hbm %s128_s0, 128 }
   0x2   :  { %s14_s7 = sshll.u32 %s91_s6, 4  ;;  %p44_p0 = scmp.ne.s32.totalorder %s128_s0, %s43_s10  ;;  %s15_s7 = int_to_ptr.vmem [resolvable:$true] %s14_s7 }
   0x3   :  { %p47_p1 = scmp.lt.u32.totalorder %s43_s10, %s128_s0 }
   0x5   :  { %p49_p2 = pnand %p47_p1, %p44_p0 }
   0x7   :  { %52 = shalt.err (!%p49_p2)
}
   0x8   :  { %s53_s15 = scalar_lea.vmem %s15_s7, 128  ;;  %p58_p4 = scmp.lt.s32.totalorder %s15_s7, %s15_s7 }
   0x9   :  { %p54_p3 = scmp.ne.s32.totalorder %s15_s7, %s53_s15  ;;  %p59_p5 = scmp.lt.s32.totalorder %s53_s15, %s53_s15 }
   0xb   :  { %p60_p6 = por %p59_p5, %p58_p4 }
   0xd   :  { %p61_p7 = pnand %p60_p6, %p54_p3 }
   0xf   :  { %64 = shalt.err (!%p61_p7)
}
  0x10   :  { %17 = dma.hbm_to_vmem [thread:$0]  %s128_s0, 128, %s15_s7, [#allocation3]  }
  0x11   :  { %87 = dma.done.wait [#allocation3], 128  }
  0x12   :  { %88 = vsyncadd [#allocation3], 4294967168  ;;  %v21_v0 = vld [vmem:[#allocation2] sm:$0xff]  ;;  %s92_s18 = smov 1   ;;  %s93_s19 = smov [#allocation5]  }
  0x13   :  { %22 = vrot.lane.b32.xlu0 %v21_v0, %s92_s18  ;;  %s31_s20 = sshll.u32 %s93_s19, 4  ;;  %s32_s20 = int_to_ptr.vmem [resolvable:$true] %s31_s20 }
  0x14   :  { %s65_s21 = scalar_lea.vmem %s32_s20, 128  ;;  %p70_p9 = scmp.lt.s32.totalorder %s32_s20, %s32_s20 }
  0x15   :  { %p66_p8 = scmp.ne.s32.totalorder %s32_s20, %s65_s21  ;;  %p71_p10 = scmp.lt.s32.totalorder %s65_s21, %s65_s21 }
  0x17   :  { %p72_p11 = por %p71_p10, %p70_p9 }
  0x19   :  { %p73_p12 = pnand %p72_p11, %p66_p8 }
  0x85   :  { %v23_v1 = vpop.permute.xlu0 %22 }
  0x86   :  { %24 = vst [vmem:[#allocation5] sm:$0xff] %v23_v1 }
  0x87   :  { %76 = shalt.err (!%p73_p12)
}
  0x88   :  { %s77_s0 = scalar_lea.hbm %s129_s1, 128 }
  0x89   :  { %p78_p13 = scmp.ne.s32.totalorder %s129_s1, %s77_s0  ;;  %p81_p0 = scmp.lt.u32.totalorder %s77_s0, %s129_s1 }
  0x8b   :  { %p83_p1 = pnand %p81_p0, %p78_p13 }
  0x8d   :  { %86 = shalt.err (!%p83_p1)
}
  0x8e   :  { %34 = dma.vmem_to_hbm [thread:$0]  %s32_s20, 128, %s129_s1, [#allocation4]  }
  0x8f   :  { %89 = dma.done.wait [#allocation4], 128  }
  0x90   :  { %90 = vsyncadd [#allocation4], 4294967168 }
  0x91   :  { %38 = vsyncpa [#allocation3], 1 }
  0x92   :  { %39 = vsyncpa [#allocation4], 1 }

</bundles_post_ra>
